<compile_context>
chip_gen: v7x
topology: tpu7x:2x2x1
jax: 0.10.0
libtpu: 0.0.40
codegen_flags: <defaults>
</compile_context>

<pallas_src>
import jax
import jax.numpy as jnp
from jax.experimental import pallas as pl
from jax.experimental.pallas import tpu as pltpu

_LANES = 128                    # vreg lane width
_SUBLANES = 8                   # vreg sublane count (f32)
_DEFAULT_TILE_ELEMS = 1 << 20   # 1M elems = 4 MiB f32 per tile
_VMEM_LIMIT_BYTES = 32 * 1024 * 1024
_MIN_KERNEL_ELEMS = _SUBLANES * _LANES   # below ~1 vreg-tile, skip pallas_call
_LANE_WIDTHS = (1024, 512, 256, 128)     # candidate last-dim widths


def _round_up(x, m):
    return ((x + m - 1) // m) * m


def _scale_bias_kernel(x_ref, w_ref, b_ref, o_ref):
    # x_ref / o_ref: (tile_rows, C) blocks in VMEM.
    # w_ref: (1, 1) in SMEM; b_ref: (1,) in SMEM.
    w = w_ref[0, 0]
    b = b_ref[0]
    o_ref[...] = (x_ref[...] * w + b).astype(o_ref.dtype)


def _xla_scale_bias(x, weight, bias):
    # Single fused elementwise pass (ideal 2N bytes of HBM traffic); used for
    # tiny inputs and for sizes that are not a multiple of 128 lanes, where a
    # pad + kernel + slice wrapper would add extra full HBM passes.
    return (x * weight[0, 0] + bias[0]).astype(x.dtype)


def linear_1x1(x, weight, bias, *, max_tile_elems=_DEFAULT_TILE_ELEMS):
    """Equivalent of nn.Linear(1, 1): x (..., 1) -> (..., 1)."""
    orig_shape = x.shape
    n = x.size

    # Tiny inputs: launch/fixed cost dwarfs the work.  Non-lane-aligned sizes:
    # avoiding the pad/slice HBM passes beats running the kernel.
    if n < _MIN_KERNEL_ELEMS or n % _LANES != 0:
        return _xla_scale_bias(x, weight, bias)

    # Lane-dense view: widest last dim (from 1024 down to 128) dividing n.
    for c in _LANE_WIDTHS:
        if n % c == 0:
            lane_dim = c
            break
    rows = n // lane_dim

    # Balanced row tiles close to max_tile_elems; no padding is ever created —
    # the final block may be partial and Pallas masks its writeback.
    max_rows = max(_SUBLANES, max_tile_elems // lane_dim)
    num_tiles = pl.cdiv(rows, max_rows)
    if num_tiles == 1:
        tile_rows = rows            # full-extent block: always a legal shape
    else:
        tile_rows = _round_up(pl.cdiv(rows, num_tiles), _SUBLANES)
        num_tiles = pl.cdiv(rows, tile_rows)

    x2 = x.reshape(rows, lane_dim)  # pure metadata reshape (n == rows * lane_dim)

    out2 = pl.pallas_call(
        _scale_bias_kernel,
        out_shape=jax.ShapeDtypeStruct((rows, lane_dim), x.dtype),
        grid=(num_tiles,),
        in_specs=[
            pl.BlockSpec((tile_rows, lane_dim), lambda i: (i, 0)),   # x tile
            pl.BlockSpec(memory_space=pltpu.MemorySpace.SMEM),       # weight
            pl.BlockSpec(memory_space=pltpu.MemorySpace.SMEM),       # bias
        ],
        out_specs=pl.BlockSpec((tile_rows, lane_dim), lambda i: (i, 0)),
        compiler_params=pltpu.CompilerParams(
            # Independent tiles: shard across TensorCores where available.
            dimension_semantics=("parallel",),
            # 2 x (in + out) x 4 MiB = 16 MiB resident; request 32 MiB so the
            # big tiles fit the scoped-VMEM limit on every generation.
            vmem_limit_bytes=_VMEM_LIMIT_BYTES,
        ),
    )(x2, weight, bias)

    return out2.reshape(orig_shape)   # rows * lane_dim == n, free reshape


if __name__ == "__main__":
    key = jax.random.PRNGKey(0)
    kx1, kx2, kx3, kw, kb = jax.random.split(key, 5)

    # Parameters mirroring nn.Linear(1, 1) init: U(-1/sqrt(fan_in), 1/sqrt(fan_in)),
    # fan_in = 1.
    weight = jax.random.uniform(kw, (1, 1), jnp.float32, minval=-1.0, maxval=1.0)
    bias = jax.random.uniform(kb, (1,), jnp.float32, minval=-1.0, maxval=1.0)

    def ref(x):
        return x @ weight.T + bias

    # 1) Tiny input (the module's natural shape): XLA shortcut path.
    x_small = jax.random.normal(kx1, (8, 1), jnp.float32)
    y_small = jax.block_until_ready(linear_1x1(x_small, weight, bias))
    assert y_small.shape == (8, 1)
    assert jnp.allclose(y_small, ref(x_small), atol=1e-6, rtol=1e-6)

    # 2) Lane-aligned batch: Pallas kernel, single full-extent tile (C = 1024).
    x_med = jax.random.normal(kx2, (4096, 1), jnp.float32)
    y_med = jax.block_until_ready(linear_1x1(x_med, weight, bias))
    assert y_med.shape == (4096, 1)
    assert jnp.allclose(y_med, ref(x_med), atol=1e-6, rtol=1e-6)

    # 3) Pallas kernel with a multi-step grid and a partial final block
    #    (tiny max_tile_elems only to exercise the pipeline on a small array).
    x_big = jax.random.normal(kx3, (2176, 1), jnp.float32)
    y_big = jax.block_until_ready(
        linear_1x1(x_big, weight, bias, max_tile_elems=1024))
    assert y_big.shape == (2176, 1)
    assert jnp.allclose(y_big, ref(x_big), atol=1e-6, rtol=1e-6)

    print("KERNEL_OK")
</pallas_src>

<mosaic_0001>
module attributes {stable_mosaic.version = 11 : i64} {
  func.func @_scale_bias_kernel(%arg0: i32, %arg1: memref<4x1024xf32, #tpu.memory_space<vmem>>, %arg2: memref<1x1xf32, #tpu.memory_space<smem>>, %arg3: memref<1xf32, #tpu.memory_space<smem>>, %arg4: memref<4x1024xf32, #tpu.memory_space<vmem>>) attributes {dimension_semantics = [#tpu.dimension_semantics<parallel>], iteration_bounds = array<i64: 1>, scalar_prefetch = 0 : i64, scratch_operands = 0 : i64, tpu.core_type = #tpu.core_type<tc>, window_params = [{transform_indices = @transform_0, window_bounds = array<i64: 4, 1024>}, {transform_indices = @transform_1, window_bounds = array<i64: 1, 1>}, {transform_indices = @transform_2, window_bounds = array<i64: 1>}, {transform_indices = @transform_3, window_bounds = array<i64: 4, 1024>}]} {
    %c0 = arith.constant 0 : index
    %c0_0 = arith.constant 0 : index
    %0 = memref.load %arg2[%c0, %c0_0] : memref<1x1xf32, #tpu.memory_space<smem>>
    %c0_1 = arith.constant 0 : index
    %1 = memref.load %arg3[%c0_1] : memref<1xf32, #tpu.memory_space<smem>>
    %c0_2 = arith.constant 0 : index
    %c0_3 = arith.constant 0 : index
    %2 = vector.load %arg1[%c0_2, %c0_3] : memref<4x1024xf32, #tpu.memory_space<vmem>>, vector<4x1024xf32>
    %3 = vector.broadcast %0 : f32 to vector<4x1024xf32>
    %4 = arith.mulf %2, %3 : vector<4x1024xf32>
    %5 = vector.broadcast %1 : f32 to vector<4x1024xf32>
    %6 = arith.addf %4, %5 : vector<4x1024xf32>
    %c0_4 = arith.constant 0 : index
    %c0_5 = arith.constant 0 : index
    %7 = vector.load %arg4[%c0_4, %c0_5] : memref<4x1024xf32, #tpu.memory_space<vmem>>, vector<4x1024xf32>
    tpu.vector_store %arg4[%c0_4, %c0_5], %6 {strides = array<i32>} : memref<4x1024xf32, #tpu.memory_space<vmem>>, vector<4x1024xf32>,
    return
  }
  func.func @transform_0(%arg0: i32) -> (i32, i32) {
    %c0_i32 = arith.constant 0 : i32
    %c0_i32_0 = arith.constant 0 : i32
    return %arg0, %c0_i32 : i32, i32
  }
  func.func @transform_1(%arg0: i32) -> (i32, i32) {
    %c0_i32 = arith.constant 0 : i32
    %c0_i32_0 = arith.constant 0 : i32
    %c0_i32_1 = arith.constant 0 : i32
    return %c0_i32, %c0_i32_0 : i32, i32
  }
  func.func @transform_2(%arg0: i32) -> i32 {
    %c0_i32 = arith.constant 0 : i32
    %c0_i32_0 = arith.constant 0 : i32
    return %c0_i32 : i32
  }
  func.func @transform_3(%arg0: i32) -> (i32, i32) {
    %c0_i32 = arith.constant 0 : i32
    %c0_i32_0 = arith.constant 0 : i32
    return %arg0, %c0_i32 : i32, i32
  }
}

</mosaic_0001>

<bundles_post_ra>
// kernel: tpu_custom_call.1
= control target key start
LH: loop header
LB: loop body
LE: loop exit
PB: predicated region body
PF: predicated region fallthrough
CT: control target
= control target key end

     0   :  { %10 = vsyncpa [#allocation5], 0  ;;  %s166_s0 = inlined_call_operand.hbm [shape: f32[4,1024], index: 0, kind: input, shape index: {}]   ;;  %s167_s1 = inlined_call_operand.<no memory space> [shape: f32[1,1], index: 1, kind: input, shape index: {}]   ;;  %s168_s2 = inlined_call_operand.<no memory space> [shape: f32[1], index: 2, kind: input, shape index: {}]   ;;  %s169_s3 = inlined_call_operand.hbm [shape: f32[4,1024], index: 3, kind: output, shape index: {}]  }
   0x1   :  { %11 = vsyncpa [#allocation6], 0  ;;  %s114_s12 = smov [#allocation4]   ;;  %s66_s16 = scalar_lea.hbm %s166_s0, 512 }
   0x2   :  { %s18_s13 = sshll.u32 %s114_s12, 4  ;;  %p67_p0 = scmp.ne.s32.totalorder %s166_s0, %s66_s16  ;;  %s19_s13 = int_to_ptr.vmem [resolvable:$true] %s18_s13 }
   0x3   :  { %p70_p1 = scmp.lt.u32.totalorder %s66_s16, %s166_s0 }
   0x5   :  { %p72_p2 = pnand %p70_p1, %p67_p0 }
   0x7   :  { %75 = shalt.err (!%p72_p2)
}
   0x8   :  { %s76_s21 = scalar_lea.vmem %s19_s13, 512  ;;  %p81_p4 = scmp.lt.s32.totalorder %s19_s13, %s19_s13 }
   0x9   :  { %p77_p3 = scmp.ne.s32.totalorder %s19_s13, %s76_s21  ;;  %p82_p5 = scmp.lt.s32.totalorder %s76_s21, %s76_s21 }
   0xb   :  { %p83_p6 = por %p82_p5, %p81_p4 }
   0xd   :  { %p84_p7 = pnand %p83_p6, %p77_p3 }
   0xf   :  { %87 = shalt.err (!%p84_p7)
}
  0x10   :  { %21 = dma.hbm_to_vmem [thread:$0]  %s166_s0, 512, %s19_s13, [#allocation5]  }
  0x11   :  { %110 = dma.done.wait [#allocation5], 512  }
  0x12   :  { %111 = vsyncadd [#allocation5], 4294966784  ;;  %v35_v0 = vstv %s167_s1  ;;  %v31_v1 = vld [vmem:[#allocation4] sm:$0xff]  ;;  %v40_v2 = vstv %s168_s2  ;;  %v32_v3 = vld [vmem:[#allocation4 + $0x8] sm:$0xff]  ;;  %s115_s28 = smov [#allocation7]  }
  0x13   :  { %v33_v4 = vld [vmem:[#allocation4 + $0x10] sm:$0xff]  ;;  %v36_v5 = vmul.f32 %v35_v0, %v31_v1  ;;  %v37_v6 = vmul.f32 %v35_v0, %v32_v3  ;;  %v34_v8 = vld [vmem:[#allocation4 + $0x18] sm:$0xff]  ;;  %s55_s29 = sshll.u32 %s115_s28, 4  ;;  %s56_s29 = int_to_ptr.vmem [resolvable:$true] %s55_s29 }
  0x14   :  { %v38_v7 = vmul.f32 %v35_v0, %v33_v4  ;;  %v39_v9 = vmul.f32 %v35_v0, %v34_v8  ;;  %s88_s0 = scalar_lea.vmem %s56_s29, 512  ;;  %p93_p9 = scmp.lt.s32.totalorder %s56_s29, %s56_s29 }
  0x15   :  { %v41_v10 = vadd.f32 %v40_v2, %v36_v5  ;;  %v42_v11 = vadd.f32 %v40_v2, %v37_v6  ;;  %p89_p8 = scmp.ne.s32.totalorder %s56_s29, %s88_s0  ;;  %p94_p10 = scmp.lt.s32.totalorder %s88_s0, %s88_s0 }
  0x16   :  { %v43_v12 = vadd.f32 %v40_v2, %v38_v7  ;;  %v44_v13 = vadd.f32 %v40_v2, %v39_v9 }
  0x17   :  { %45 = vst [vmem:[#allocation7] sm:$0xff] %v41_v10  ;;  %46 = vst [vmem:[#allocation7 + $0x8] sm:$0xff] %v42_v11  ;;  %p95_p11 = por %p94_p10, %p93_p9 }
  0x18   :  { %47 = vst [vmem:[#allocation7 + $0x10] sm:$0xff] %v43_v12  ;;  %48 = vst [vmem:[#allocation7 + $0x18] sm:$0xff] %v44_v13 }
  0x19   :  { %p96_p12 = pnand %p95_p11, %p89_p8 }
  0x1b   :  { %99 = shalt.err (!%p96_p12)
}
  0x1c   :  { %s100_s30 = scalar_lea.hbm %s169_s3, 512 }
  0x1d   :  { %p101_p13 = scmp.ne.s32.totalorder %s169_s3, %s100_s30  ;;  %p104_p0 = scmp.lt.u32.totalorder %s100_s30, %s169_s3 }
  0x1f   :  { %p106_p1 = pnand %p104_p0, %p101_p13 }
  0x21   :  { %109 = shalt.err (!%p106_p1)
}
  0x22   :  { %58 = dma.vmem_to_hbm [thread:$0]  %s56_s29, 512, %s169_s3, [#allocation6]  }
  0x23   :  { %112 = dma.done.wait [#allocation6], 512  }
  0x24   :  { %113 = vsyncadd [#allocation6], 4294966784 }
  0x25   :  { %62 = vsyncpa [#allocation5], 1 }
  0x26   :  { %63 = vsyncpa [#allocation6], 1 }

</bundles_post_ra>
